<compile_context>
chip_gen: v7x
topology: tpu7x:2x2x1
jax: 0.10.0
libtpu: 0.0.40
codegen_flags: <defaults>
</compile_context>

<pallas_src>
import jax
import jax.numpy as jnp
from jax.experimental import pallas as pl
from jax.experimental.pallas import tpu as pltpu

# ---- module hyper-parameters (chosen so the reference forward is well defined) ----
IN_DIM = 4
REGION = 3
D_K = 16
D_V = 16
N_HEAD = 8
BATCH = 1
SEQ = 128                                # multiple of 128 -> lane-dense layout

DK_PER_HEAD = D_K // N_HEAD              # 2
DV_PER_HEAD = D_V // N_HEAD              # 2
TEMPER = int(D_K ** 0.5)                 # int(np.sqrt(d_k)) = 4 (truncation is intentional)
H_Q = D_K - 2                            # stretch conv (3x3 kernel, pad (0,1)) shrinks height by 2
H_V = D_V - 2
N_GROUP = (BATCH * H_Q) // DK_PER_HEAD   # 7   (the "-1" dim of the reshape)
G = 8                                    # group rows padded to one full sublane tile
N_ROWS = 6 * G                           # 48 = [Qe|Qo|Ke|Ko|Ve|Vo], 8 rows each

assert (BATCH * H_Q) % DK_PER_HEAD == 0
assert N_GROUP * DV_PER_HEAD == H_V      # required for the broadcast in forward()
assert DK_PER_HEAD == 2 and DV_PER_HEAD == 2 and D_K == D_V and REGION == 3
assert N_ROWS == 3 * D_K


def _regional_attention_kernel(x_ref, w_ref, out_ref):
    """Whole forward pass for one batch element, fully VMEM resident.

    x_ref  : (C_in, L)   input, sequence on the lanes
    w_ref  : (48, C_in)  fused QKV 1x1-conv weights, rows pre-permuted to
                         [Q_even | Q_odd | K_even | K_odd | V_even | V_odd] (8 rows
                         each); Q rows already carry the 1/temper softmax scale
    out_ref: (16, L)     final interleaved output rows 0..13; rows 14/15 are scratch
    """
    x = x_ref[...]                                   # (C_in, L)  f32
    w = w_ref[...]                                   # (48, C_in) f32
    L = x.shape[-1]

    # Fused QKV projection.  Contraction dim is only C_in = 4: four broadcast MACs on the
    # VPU (exact f32) — never the MXU for a (48,4)@(4,L) shape.
    qkv = w[:, 0:1] * x[0:1, :]                      # (48, L)
    for c in range(1, IN_DIM):
        qkv = qkv + w[:, c:c + 1] * x[c:c + 1, :]

    qE, qO, kE, kO, vE, vO = (qkv[b * G:(b + 1) * G] for b in range(6))

    # Head-group pair products (the two halves of the dk_per_head=2 sum).  Column shifts,
    # row rolls and the 0/1 padding masks all commute with this product, so from here on
    # we only ever roll / mask single (8, L) vregs — never the 48-row slab.
    pE = qE * kE                                     # (1/temper) * Q0[2g]   * K0[2g]
    pO = qO * kO                                     # (1/temper) * Q0[2g+1] * K0[2g+1]

    # "+1 group" (= +2 original rows) sublane rolls: single-vreg, row 7 is scratch.
    roll1 = lambda a: pltpu.roll(a, shift=G - 1, axis=0)
    pE1, pO1 = roll1(pE), roll1(pO)
    vE1, vO1 = roll1(vE), roll1(vO)

    # Row offsets i = 0,1,2 of the 3x3 stretch window in the unshifted (j=1) frame:
    # pre-softmax logit sums and the (even-output-row V, odd-output-row V) picks.
    base_s = (pE + pO, pO + pE1, pE1 + pO1)
    base_v = (vE, vO, vE1, vO1)

    # Column-shift masks for the stretch conv's zero padding, built once on one (8,L) iota.
    col = jax.lax.broadcasted_iota(jnp.int32, (G, L), 1)
    m_l = col >= 1            # reading l-1 is valid  (j = 0)
    m_r = col < L - 1         # reading l+1 is valid  (j = 2)

    def shifted(a, j):        # column offset d = j - 1 of the stretch window
        if j == 0:
            return jnp.where(m_l, pltpu.roll(a, shift=1, axis=1), 0.0)
        if j == 2:
            return jnp.where(m_r, pltpu.roll(a, shift=L - 1, axis=1), 0.0)
        return a

    # All 9 region channels c = (i, j): logits + matching even/odd V rows.
    chans = []
    for j in range(REGION):
        s0, s1, s2 = (shifted(s, j) for s in base_s)
        ve, vo, ve1, vo1 = (shifted(v, j) for v in base_v)
        chans += [(s0, ve, vo), (s1, vo, ve1), (s2, ve1, vo1)]

    # Numerically stable softmax over the 9 channels (torch.Softmax(dim=1)), fused with
    # the weighted-V accumulation: each exp feeds denom / out_even / out_odd immediately.
    m = chans[0][0]
    for s, _, _ in chans[1:]:
        m = jnp.maximum(m, s)

    s0, ve0, vo0 = chans[0]
    e = jnp.exp(s0 - m)                              # 1/temper already folded into Q rows
    denom, out_even, out_odd = e, e * ve0, e * vo0
    for s, ve, vo in chans[1:]:
        e = jnp.exp(s - m)
        denom = denom + e
        out_even = out_even + e * ve
        out_odd = out_odd + e * vo

    inv_denom = pl.reciprocal(denom, approx=True)    # EUP vrcp — ~free slot

    # Interleave even/odd output rows directly with sublane-strided stores so the kernel
    # emits the module's final row order (no wrapper re-interleave / extra HBM roundtrip).
    out_ref[pl.ds(0, G, stride=2), :] = out_even * inv_denom    # rows 0,2,...,14
    out_ref[pl.ds(1, G, stride=2), :] = out_odd * inv_denom     # rows 1,3,...,15


def prepare_weights(wq, wk, wv):
    """One-time init-side plumbing (do NOT run per forward call):
      * permute Q/K/V rows to even-then-odd order so the kernel's projection lands
        directly in 8-row de-interleaved blocks (all in-kernel slices 8-aligned),
      * fuse the three 1x1 convs into one (48, C_in) weight (one DMA, one MAC chain),
      * fold the 1/temper softmax scale (0.25, exact in f32) into the Q rows.
    """
    perm = jnp.concatenate([jnp.arange(0, D_K, 2), jnp.arange(1, D_K, 2)])
    return jnp.concatenate([wq[perm] * (1.0 / TEMPER), wk[perm], wv[perm]], axis=0)


@jax.jit
def regional_attention(x, w_all):
    """Mirrors MultiHeadRegionalAttention1D.forward (output_score=False, eval mode).

    x     : (B, C_in, L) with B == 1
    w_all : (48, C_in) produced once by prepare_weights()
    Returns (attention_out, attention_out); attention_out has shape (B, d_v - 2, L).
    """
    B, c_in, L = x.shape
    assert B == BATCH and c_in == IN_DIM and w_all.shape == (N_ROWS, IN_DIM)

    vspec = pl.BlockSpec(memory_space=pltpu.MemorySpace.VMEM)
    out16 = pl.pallas_call(
        _regional_attention_kernel,
        out_shape=jax.ShapeDtypeStruct((2 * G, L), jnp.float32),
        in_specs=[vspec, vspec],
        out_specs=vspec,
    )(x[0], w_all)

    attention_out = out16[:H_V][None]                # drop the 2 scratch rows, add batch
    return attention_out, attention_out


# ------------------------- pure-JAX reference of the PyTorch forward ----------------
def _reference(x, wq, wk, wv):
    B, _, L = x.shape
    hp = jax.lax.Precision.HIGHEST
    q0 = jnp.einsum('oc,bcl->bol', wq, x, precision=hp)
    k0 = jnp.einsum('oc,bcl->bol', wk, x, precision=hp)
    v0 = jnp.einsum('oc,bcl->bol', wv, x, precision=hp)

    def stretch(a):   # (B, C, L) -> (B, 9, C-2, L): conv2d with delta weights, pad (0,1)
        ap = jnp.pad(a, ((0, 0), (0, 0), (1, 1)))
        h = a.shape[1] - 2
        return jnp.stack([ap[:, i:i + h, j:j + L]
                          for i in range(REGION) for j in range(REGION)], axis=1)

    Q, K, V = stretch(q0), stretch(k0), stretch(v0)
    qk = (Q * K).transpose(0, 2, 1, 3)                        # (B, H_Q, 9, L)
    qk1 = qk.reshape(-1, DK_PER_HEAD, REGION * REGION, L)
    score = jax.nn.softmax(qk1.sum(axis=1) / TEMPER, axis=1)  # (N_GROUP, 9, L)
    score2 = jnp.repeat(score[None].transpose(0, 2, 1, 3), DV_PER_HEAD, axis=2)
    return (score2 * V).sum(axis=1)                           # (B, H_V, L)


if __name__ == "__main__":
    key = jax.random.PRNGKey(0)
    kx, kq, kk, kv = jax.random.split(key, 4)

    x = jax.random.normal(kx, (BATCH, IN_DIM, SEQ), jnp.float32)
    bound = 1.0 / (IN_DIM ** 0.5)   # deterministic stand-in for Conv1d default init
    wq = jax.random.uniform(kq, (D_K, IN_DIM), jnp.float32, -bound, bound)
    wk = jax.random.uniform(kk, (D_K, IN_DIM), jnp.float32, -bound, bound)
    wv = jax.random.uniform(kv, (D_V, IN_DIM), jnp.float32, -bound, bound)

    w_all = prepare_weights(wq, wk, wv)           # one-time init: layout + temper fold

    out, _ = regional_attention(x, w_all)
    jax.block_until_ready(out)

    ref = _reference(x, wq, wk, wv)
    assert out.shape == (BATCH, H_V, SEQ), out.shape
    max_err = float(jnp.max(jnp.abs(out - ref)))
    assert max_err < 2e-3, f"mismatch vs reference: {max_err}"

    print("KERNEL_OK")
</pallas_src>

<mosaic_0001>
module attributes {stable_mosaic.version = 11 : i64} {
  func.func @_regional_attention_kernel(%arg0: memref<4x128xf32, #tpu.memory_space<vmem>>, %arg1: memref<48x4xf32, #tpu.memory_space<vmem>>, %arg2: memref<16x128xf32, #tpu.memory_space<vmem>>) attributes {dimension_semantics = [], scalar_prefetch = 0 : i64, scratch_operands = 0 : i64, tpu.core_type = #tpu.core_type<tc>} {
    %c0 = arith.constant 0 : index
    %c0_0 = arith.constant 0 : index
    %0 = vector.load %arg0[%c0, %c0_0] : memref<4x128xf32, #tpu.memory_space<vmem>>, vector<4x128xf32>
    %c0_1 = arith.constant 0 : index
    %c0_2 = arith.constant 0 : index
    %1 = vector.load %arg1[%c0_1, %c0_2] : memref<48x4xf32, #tpu.memory_space<vmem>>, vector<48x4xf32>
    %2 = vector.extract_strided_slice %1 {offsets = [0, 0], sizes = [48, 1], strides = [1, 1]} : vector<48x4xf32> to vector<48x1xf32>
    %3 = vector.extract_strided_slice %0 {offsets = [0, 0], sizes = [1, 128], strides = [1, 1]} : vector<4x128xf32> to vector<1x128xf32>
    %4 = vector.broadcast %2 : vector<48x1xf32> to vector<48x128xf32>
    %5 = vector.broadcast %3 : vector<1x128xf32> to vector<48x128xf32>
    %6 = arith.mulf %4, %5 : vector<48x128xf32>
    %7 = vector.extract_strided_slice %1 {offsets = [0, 1], sizes = [48, 1], strides = [1, 1]} : vector<48x4xf32> to vector<48x1xf32>
    %8 = vector.extract_strided_slice %0 {offsets = [1, 0], sizes = [1, 128], strides = [1, 1]} : vector<4x128xf32> to vector<1x128xf32>
    %9 = vector.broadcast %7 : vector<48x1xf32> to vector<48x128xf32>
    %10 = vector.broadcast %8 : vector<1x128xf32> to vector<48x128xf32>
    %11 = arith.mulf %9, %10 : vector<48x128xf32>
    %12 = arith.addf %6, %11 : vector<48x128xf32>
    %13 = vector.extract_strided_slice %1 {offsets = [0, 2], sizes = [48, 1], strides = [1, 1]} : vector<48x4xf32> to vector<48x1xf32>
    %14 = vector.extract_strided_slice %0 {offsets = [2, 0], sizes = [1, 128], strides = [1, 1]} : vector<4x128xf32> to vector<1x128xf32>
    %15 = vector.broadcast %13 : vector<48x1xf32> to vector<48x128xf32>
    %16 = vector.broadcast %14 : vector<1x128xf32> to vector<48x128xf32>
    %17 = arith.mulf %15, %16 : vector<48x128xf32>
    %18 = arith.addf %12, %17 : vector<48x128xf32>
    %19 = vector.extract_strided_slice %1 {offsets = [0, 3], sizes = [48, 1], strides = [1, 1]} : vector<48x4xf32> to vector<48x1xf32>
    %20 = vector.extract_strided_slice %0 {offsets = [3, 0], sizes = [1, 128], strides = [1, 1]} : vector<4x128xf32> to vector<1x128xf32>
    %21 = vector.broadcast %19 : vector<48x1xf32> to vector<48x128xf32>
    %22 = vector.broadcast %20 : vector<1x128xf32> to vector<48x128xf32>
    %23 = arith.mulf %21, %22 : vector<48x128xf32>
    %24 = arith.addf %18, %23 : vector<48x128xf32>
    %25 = vector.extract_strided_slice %24 {offsets = [0, 0], sizes = [8, 128], strides = [1, 1]} : vector<48x128xf32> to vector<8x128xf32>
    %26 = vector.extract_strided_slice %24 {offsets = [8, 0], sizes = [8, 128], strides = [1, 1]} : vector<48x128xf32> to vector<8x128xf32>
    %27 = vector.extract_strided_slice %24 {offsets = [16, 0], sizes = [8, 128], strides = [1, 1]} : vector<48x128xf32> to vector<8x128xf32>
    %28 = vector.extract_strided_slice %24 {offsets = [24, 0], sizes = [8, 128], strides = [1, 1]} : vector<48x128xf32> to vector<8x128xf32>
    %29 = vector.extract_strided_slice %24 {offsets = [32, 0], sizes = [8, 128], strides = [1, 1]} : vector<48x128xf32> to vector<8x128xf32>
    %30 = vector.extract_strided_slice %24 {offsets = [40, 0], sizes = [8, 128], strides = [1, 1]} : vector<48x128xf32> to vector<8x128xf32>
    %31 = arith.mulf %25, %27 : vector<8x128xf32>
    %32 = arith.mulf %26, %28 : vector<8x128xf32>
    %c7_i32 = arith.constant 7 : i32
    %33 = tpu.dynamic_rotate %31 by %c7_i32 dim 0 : vector<8x128xf32>, i32 -> vector<8x128xf32>
    %c7_i32_3 = arith.constant 7 : i32
    %34 = tpu.dynamic_rotate %32 by %c7_i32_3 dim 0 : vector<8x128xf32>, i32 -> vector<8x128xf32>
    %c7_i32_4 = arith.constant 7 : i32
    %35 = tpu.dynamic_rotate %29 by %c7_i32_4 dim 0 : vector<8x128xf32>, i32 -> vector<8x128xf32>
    %c7_i32_5 = arith.constant 7 : i32
    %36 = tpu.dynamic_rotate %30 by %c7_i32_5 dim 0 : vector<8x128xf32>, i32 -> vector<8x128xf32>
    %37 = arith.addf %31, %32 : vector<8x128xf32>
    %38 = arith.addf %32, %33 : vector<8x128xf32>
    %39 = arith.addf %33, %34 : vector<8x128xf32>
    %40 = tpu.iota {dimensions = array<i32: 1>} : vector<8x128xi32>
    %c1_i32 = arith.constant 1 : i32
    %41 = vector.broadcast %c1_i32 : i32 to vector<8x128xi32>
    %42 = arith.cmpi sge, %40, %41 : vector<8x128xi32>
    %c127_i32 = arith.constant 127 : i32
    %43 = vector.broadcast %c127_i32 : i32 to vector<8x128xi32>
    %44 = arith.cmpi slt, %40, %43 : vector<8x128xi32>
    %c1_i32_6 = arith.constant 1 : i32
    %45 = tpu.dynamic_rotate %37 by %c1_i32_6 dim 1 : vector<8x128xf32>, i32 -> vector<8x128xf32>
    %cst = arith.constant 0.000000e+00 : f32
    %46 = vector.broadcast %cst : f32 to vector<8x128xf32>
    %47 = arith.select %42, %45, %46 : vector<8x128xi1>, vector<8x128xf32>
    %c1_i32_7 = arith.constant 1 : i32
    %48 = tpu.dynamic_rotate %38 by %c1_i32_7 dim 1 : vector<8x128xf32>, i32 -> vector<8x128xf32>
    %cst_8 = arith.constant 0.000000e+00 : f32
    %49 = vector.broadcast %cst_8 : f32 to vector<8x128xf32>
    %50 = arith.select %42, %48, %49 : vector<8x128xi1>, vector<8x128xf32>
    %c1_i32_9 = arith.constant 1 : i32
    %51 = tpu.dynamic_rotate %39 by %c1_i32_9 dim 1 : vector<8x128xf32>, i32 -> vector<8x128xf32>
    %cst_10 = arith.constant 0.000000e+00 : f32
    %52 = vector.broadcast %cst_10 : f32 to vector<8x128xf32>
    %53 = arith.select %42, %51, %52 : vector<8x128xi1>, vector<8x128xf32>
    %c1_i32_11 = arith.constant 1 : i32
    %54 = tpu.dynamic_rotate %29 by %c1_i32_11 dim 1 : vector<8x128xf32>, i32 -> vector<8x128xf32>
    %cst_12 = arith.constant 0.000000e+00 : f32
    %55 = vector.broadcast %cst_12 : f32 to vector<8x128xf32>
    %56 = arith.select %42, %54, %55 : vector<8x128xi1>, vector<8x128xf32>
    %c1_i32_13 = arith.constant 1 : i32
    %57 = tpu.dynamic_rotate %30 by %c1_i32_13 dim 1 : vector<8x128xf32>, i32 -> vector<8x128xf32>
    %cst_14 = arith.constant 0.000000e+00 : f32
    %58 = vector.broadcast %cst_14 : f32 to vector<8x128xf32>
    %59 = arith.select %42, %57, %58 : vector<8x128xi1>, vector<8x128xf32>
    %c1_i32_15 = arith.constant 1 : i32
    %60 = tpu.dynamic_rotate %35 by %c1_i32_15 dim 1 : vector<8x128xf32>, i32 -> vector<8x128xf32>
    %cst_16 = arith.constant 0.000000e+00 : f32
    %61 = vector.broadcast %cst_16 : f32 to vector<8x128xf32>
    %62 = arith.select %42, %60, %61 : vector<8x128xi1>, vector<8x128xf32>
    %c1_i32_17 = arith.constant 1 : i32
    %63 = tpu.dynamic_rotate %36 by %c1_i32_17 dim 1 : vector<8x128xf32>, i32 -> vector<8x128xf32>
    %cst_18 = arith.constant 0.000000e+00 : f32
    %64 = vector.broadcast %cst_18 : f32 to vector<8x128xf32>
    %65 = arith.select %42, %63, %64 : vector<8x128xi1>, vector<8x128xf32>
    %c127_i32_19 = arith.constant 127 : i32
    %66 = tpu.dynamic_rotate %37 by %c127_i32_19 dim 1 : vector<8x128xf32>, i32 -> vector<8x128xf32>
    %cst_20 = arith.constant 0.000000e+00 : f32
    %67 = vector.broadcast %cst_20 : f32 to vector<8x128xf32>
    %68 = arith.select %44, %66, %67 : vector<8x128xi1>, vector<8x128xf32>
    %c127_i32_21 = arith.constant 127 : i32
    %69 = tpu.dynamic_rotate %38 by %c127_i32_21 dim 1 : vector<8x128xf32>, i32 -> vector<8x128xf32>
    %cst_22 = arith.constant 0.000000e+00 : f32
    %70 = vector.broadcast %cst_22 : f32 to vector<8x128xf32>
    %71 = arith.select %44, %69, %70 : vector<8x128xi1>, vector<8x128xf32>
    %c127_i32_23 = arith.constant 127 : i32
    %72 = tpu.dynamic_rotate %39 by %c127_i32_23 dim 1 : vector<8x128xf32>, i32 -> vector<8x128xf32>
    %cst_24 = arith.constant 0.000000e+00 : f32
    %73 = vector.broadcast %cst_24 : f32 to vector<8x128xf32>
    %74 = arith.select %44, %72, %73 : vector<8x128xi1>, vector<8x128xf32>
    %c127_i32_25 = arith.constant 127 : i32
    %75 = tpu.dynamic_rotate %29 by %c127_i32_25 dim 1 : vector<8x128xf32>, i32 -> vector<8x128xf32>
    %cst_26 = arith.constant 0.000000e+00 : f32
    %76 = vector.broadcast %cst_26 : f32 to vector<8x128xf32>
    %77 = arith.select %44, %75, %76 : vector<8x128xi1>, vector<8x128xf32>
    %c127_i32_27 = arith.constant 127 : i32
    %78 = tpu.dynamic_rotate %30 by %c127_i32_27 dim 1 : vector<8x128xf32>, i32 -> vector<8x128xf32>
    %cst_28 = arith.constant 0.000000e+00 : f32
    %79 = vector.broadcast %cst_28 : f32 to vector<8x128xf32>
    %80 = arith.select %44, %78, %79 : vector<8x128xi1>, vector<8x128xf32>
    %c127_i32_29 = arith.constant 127 : i32
    %81 = tpu.dynamic_rotate %35 by %c127_i32_29 dim 1 : vector<8x128xf32>, i32 -> vector<8x128xf32>
    %cst_30 = arith.constant 0.000000e+00 : f32
    %82 = vector.broadcast %cst_30 : f32 to vector<8x128xf32>
    %83 = arith.select %44, %81, %82 : vector<8x128xi1>, vector<8x128xf32>
    %c127_i32_31 = arith.constant 127 : i32
    %84 = tpu.dynamic_rotate %36 by %c127_i32_31 dim 1 : vector<8x128xf32>, i32 -> vector<8x128xf32>
    %cst_32 = arith.constant 0.000000e+00 : f32
    %85 = vector.broadcast %cst_32 : f32 to vector<8x128xf32>
    %86 = arith.select %44, %84, %85 : vector<8x128xi1>, vector<8x128xf32>
    %87 = arith.maximumf %47, %50 : vector<8x128xf32>
    %88 = arith.maximumf %87, %53 : vector<8x128xf32>
    %89 = arith.maximumf %88, %37 : vector<8x128xf32>
    %90 = arith.maximumf %89, %38 : vector<8x128xf32>
    %91 = arith.maximumf %90, %39 : vector<8x128xf32>
    %92 = arith.maximumf %91, %68 : vector<8x128xf32>
    %93 = arith.maximumf %92, %71 : vector<8x128xf32>
    %94 = arith.maximumf %93, %74 : vector<8x128xf32>
    %95 = arith.subf %47, %94 : vector<8x128xf32>
    %96 = math.exp %95 : vector<8x128xf32>
    %97 = arith.mulf %96, %56 : vector<8x128xf32>
    %98 = arith.mulf %96, %59 : vector<8x128xf32>
    %99 = arith.subf %50, %94 : vector<8x128xf32>
    %100 = math.exp %99 : vector<8x128xf32>
    %101 = arith.addf %96, %100 : vector<8x128xf32>
    %102 = arith.mulf %100, %59 : vector<8x128xf32>
    %103 = arith.addf %97, %102 : vector<8x128xf32>
    %104 = arith.mulf %100, %62 : vector<8x128xf32>
    %105 = arith.addf %98, %104 : vector<8x128xf32>
    %106 = arith.subf %53, %94 : vector<8x128xf32>
    %107 = math.exp %106 : vector<8x128xf32>
    %108 = arith.addf %101, %107 : vector<8x128xf32>
    %109 = arith.mulf %107, %62 : vector<8x128xf32>
    %110 = arith.addf %103, %109 : vector<8x128xf32>
    %111 = arith.mulf %107, %65 : vector<8x128xf32>
    %112 = arith.addf %105, %111 : vector<8x128xf32>
    %113 = arith.subf %37, %94 : vector<8x128xf32>
    %114 = math.exp %113 : vector<8x128xf32>
    %115 = arith.addf %108, %114 : vector<8x128xf32>
    %116 = arith.mulf %114, %29 : vector<8x128xf32>
    %117 = arith.addf %110, %116 : vector<8x128xf32>
    %118 = arith.mulf %114, %30 : vector<8x128xf32>
    %119 = arith.addf %112, %118 : vector<8x128xf32>
    %120 = arith.subf %38, %94 : vector<8x128xf32>
    %121 = math.exp %120 : vector<8x128xf32>
    %122 = arith.addf %115, %121 : vector<8x128xf32>
    %123 = arith.mulf %121, %30 : vector<8x128xf32>
    %124 = arith.addf %117, %123 : vector<8x128xf32>
    %125 = arith.mulf %121, %35 : vector<8x128xf32>
    %126 = arith.addf %119, %125 : vector<8x128xf32>
    %127 = arith.subf %39, %94 : vector<8x128xf32>
    %128 = math.exp %127 : vector<8x128xf32>
    %129 = arith.addf %122, %128 : vector<8x128xf32>
    %130 = arith.mulf %128, %35 : vector<8x128xf32>
    %131 = arith.addf %124, %130 : vector<8x128xf32>
    %132 = arith.mulf %128, %36 : vector<8x128xf32>
    %133 = arith.addf %126, %132 : vector<8x128xf32>
    %134 = arith.subf %68, %94 : vector<8x128xf32>
    %135 = math.exp %134 : vector<8x128xf32>
    %136 = arith.addf %129, %135 : vector<8x128xf32>
    %137 = arith.mulf %135, %77 : vector<8x128xf32>
    %138 = arith.addf %131, %137 : vector<8x128xf32>
    %139 = arith.mulf %135, %80 : vector<8x128xf32>
    %140 = arith.addf %133, %139 : vector<8x128xf32>
    %141 = arith.subf %71, %94 : vector<8x128xf32>
    %142 = math.exp %141 : vector<8x128xf32>
    %143 = arith.addf %136, %142 : vector<8x128xf32>
    %144 = arith.mulf %142, %80 : vector<8x128xf32>
    %145 = arith.addf %138, %144 : vector<8x128xf32>
    %146 = arith.mulf %142, %83 : vector<8x128xf32>
    %147 = arith.addf %140, %146 : vector<8x128xf32>
    %148 = arith.subf %74, %94 : vector<8x128xf32>
    %149 = math.exp %148 : vector<8x128xf32>
    %150 = arith.addf %143, %149 : vector<8x128xf32>
    %151 = arith.mulf %149, %83 : vector<8x128xf32>
    %152 = arith.addf %145, %151 : vector<8x128xf32>
    %153 = arith.mulf %149, %86 : vector<8x128xf32>
    %154 = arith.addf %147, %153 : vector<8x128xf32>
    %155 = tpu.reciprocal %150 {approx = true} : vector<8x128xf32> -> vector<8x128xf32>
    %156 = arith.mulf %152, %155 : vector<8x128xf32>
    %c0_33 = arith.constant 0 : index
    %c0_34 = arith.constant 0 : index
    %157 = tpu.strided_load %arg2[%c0_33, %c0_34] {strides = array<i32: 2, 1>} : memref<16x128xf32, #tpu.memory_space<vmem>>, vector<8x128xf32>
    tpu.strided_store %arg2[%c0_33, %c0_34], %156 {strides = array<i32: 2, 1>} : memref<16x128xf32, #tpu.memory_space<vmem>>, vector<8x128xf32>
    %158 = arith.mulf %154, %155 : vector<8x128xf32>
    %c1 = arith.constant 1 : index
    %c0_35 = arith.constant 0 : index
    %159 = tpu.strided_load %arg2[%c1, %c0_35] {strides = array<i32: 2, 1>} : memref<16x128xf32, #tpu.memory_space<vmem>>, vector<8x128xf32>
    tpu.strided_store %arg2[%c1, %c0_35], %158 {strides = array<i32: 2, 1>} : memref<16x128xf32, #tpu.memory_space<vmem>>, vector<8x128xf32>
    return
  }
}

</mosaic_0001>

<bundles_post_ra>
// kernel: regional_attention.1
= control target key start
LH: loop header
LB: loop body
LE: loop exit
PB: predicated region body
PF: predicated region fallthrough
CT: control target
= control target key end

     0   :  { %v363_v0 = vmov 1   ;;  %v364_v1 = vmov 0   ;;  %v365_v6 = vmov 2   ;;  %v366_v7 = vmov 3   ;;  %s368_s22 = smov 127   ;;  %s502_s1 = inlined_call_operand.vmem [shape: f32[48,4], index: 1, kind: input, shape index: {}]   ;;  %s503_s0 = inlined_call_operand.vmem [shape: f32[4,128], index: 0, kind: input, shape index: {}]   ;;  %s504_s2 = inlined_call_operand.vmem [shape: f32[16,128], index: 2, kind: output, shape index: {}]  }
   0x1   :  { %328 = vset.pattern.permute.xlu1 %v363_v0  ;;  %327 = vset.pattern.permute.xlu0 %v364_v1  ;;  %v12_v2 = vld [vmem:[%s502_s1] sm:$0xff]  ;;  %v14_v3 = vld [vmem:[%s502_s1 + $0x10] sm:$0xff]  ;;  %v13_v4 = vld [vmem:[%s502_s1 + $0x8] sm:$0xff]  ;;  %v48_v16 = vlaneseq }
   0x2   :  { %59 = vperm.xlu1 %328, %v12_v2   ;;  %20 = vperm.xlu0 %327, %v12_v2   ;;  %v15_v5 = vld [vmem:[%s502_s1 + $0x18] sm:$0xff]  ;;  %v16_v8 = vld [vmem:[%s502_s1 + $0x20] sm:$0xff]  ;;  %v17_v9 = vld [vmem:[%s502_s1 + $0x28] sm:$0xff] }
   0x3   :  { %v49_v18 = vshrl.u32 %v48_v16, 7  ;;  %v11_v23 = vld [vmem:[%s503_s0] sm:$0xf]  ;;  %s367_s0 = smov 1  }
   0x5   :  { %v84_v21 = vsub.s32 1, %v49_v18  ;;  %v50_v22 = vsub.s32 0, %v49_v18  ;;  %v124_v24 = vsub.s32 2, %v49_v18  ;;  %v164_v30 = vsub.s32 3, %v49_v18 }
   0x6   :  { %67 = vperm.xlu1 %328, %v14_v3   ;;  %30 = vperm.xlu0 %327, %v14_v3  }
   0x7   :  { %v85_v27 = vrot.slane %v11_v23, %v84_v21  ;;  %v51_v28 = vrot.slane %v11_v23, %v50_v22  ;;  %v406_v29 = vrot.slane %v11_v23, %v124_v24  ;;  %v165_v39 = vrot.slane %v11_v23, %v164_v30 }
   0xa   :  { %329 = vset.pattern.permute.xlu1 %v364_v1  ;;  %25 = vperm.xlu0 %327, %v13_v4  }
   0xb   :  { %35 = vperm.xlu1 %329, %v15_v5  }
   0xe   :  { %330 = vset.pattern.permute.xlu0 %v363_v0 }
   0xf   :  { %331 = vset.pattern.permute.xlu1 %v363_v0  ;;  %63 = vperm.xlu0 %330, %v13_v4  }
  0x10   :  { %71 = vperm.xlu1 %331, %v15_v5  }
  0x13   :  { %333 = vset.pattern.permute.xlu0 %v365_v6 }
  0x14   :  { %332 = vset.pattern.permute.xlu1 %v365_v6  ;;  %107 = vperm.xlu0 %333, %v14_v3  }
  0x15   :  { %99 = vperm.xlu1 %332, %v12_v2  }
  0x18   :  { %334 = vset.pattern.permute.xlu0 %v366_v7 }
  0x19   :  { %103 = vperm.xlu1 %332, %v13_v4   ;;  %139 = vperm.xlu0 %334, %v12_v2  }
  0x1d   :  { %111 = vperm.xlu1 %332, %v15_v5   ;;  %151 = vperm.xlu0 %334, %v15_v5  }
  0x21   :  { %335 = vset.pattern.permute.xlu1 %v366_v7  ;;  %337 = vset.pattern.permute.xlu0 %v363_v0 }
  0x22   :  { %147 = vperm.xlu1 %335, %v14_v3   ;;  %75 = vperm.xlu0 %337, %v16_v8  }
  0x26   :  { %143 = vperm.xlu1 %335, %v13_v4   ;;  %339 = vset.pattern.permute.xlu0 %v365_v6 }
  0x27   :  { %115 = vperm.xlu0 %339, %v16_v8  }
  0x2a   :  { %336 = vset.pattern.permute.xlu1 %v364_v1 }
  0x2b   :  { %40 = vperm.xlu1 %336, %v16_v8   ;;  %342 = vset.pattern.permute.xlu0 %v366_v7 }
  0x2c   :  { %159 = vperm.xlu0 %342, %v17_v9  }
  0x2f   :  { %45 = vperm.xlu1 %336, %v17_v9  }
  0x33   :  { %338 = vset.pattern.permute.xlu1 %v363_v0 }
  0x34   :  { %79 = vperm.xlu1 %338, %v17_v9  }
  0x38   :  { %340 = vset.pattern.permute.xlu1 %v365_v6 }
  0x39   :  { %119 = vperm.xlu1 %340, %v17_v9  }
  0x3d   :  { %341 = vset.pattern.permute.xlu1 %v366_v7 }
  0x3e   :  { %155 = vperm.xlu1 %341, %v16_v8  }
  0x81   :  { %v60_v10 = vpop.permute.xlu1 %59  ;;  %v21_v11 = vpop.permute.xlu0 %20 }
  0x82   :  { %v86_v34 = vmul.f32 %v85_v27, %v60_v10  ;;  %v52_v35 = vmul.f32 %v51_v28, %v21_v11 }
  0x84   :  { %v92_v45 = vadd.f32 %v86_v34, %v52_v35 }
  0x85   :  { %v68_v12 = vpop.permute.xlu1 %67  ;;  %v31_v13 = vpop.permute.xlu0 %30 }
  0x86   :  { %v88_v31 = vmul.f32 %v85_v27, %v68_v12  ;;  %v54_v32 = vmul.f32 %v51_v28, %v31_v13 }
  0x88   :  { %v94_v42 = vadd.f32 %v88_v31, %v54_v32 }
  0x89   :  { %v26_v15 = vpop.permute.xlu0 %25 }
  0x8a   :  { %v36_v14 = vpop.permute.xlu1 %35  ;;  %v53_v46 = vmul.f32 %v51_v28, %v26_v15 }
  0x8b   :  { %v55_v40 = vmul.f32 %v51_v28, %v36_v14 }
  0x8e   :  { %v64_v19 = vpop.permute.xlu0 %63 }
  0x8f   :  { %v72_v17 = vpop.permute.xlu1 %71  ;;  %v87_v41 = vmul.f32 %v85_v27, %v64_v19 }
  0x90   :  { %v89_v36 = vmul.f32 %v85_v27, %v72_v17 }
  0x91   :  { %v93_v54 = vadd.f32 %v87_v41, %v53_v46 }
  0x92   :  { %v95_v47 = vadd.f32 %v89_v36, %v55_v40 }
  0x93   :  { %v108_v25 = vpop.permute.xlu0 %107 }
  0x94   :  { %v100_v20 = vpop.permute.xlu1 %99  ;;  %v128_v38 = vmul.f32 %v406_v29, %v108_v25 }
  0x95   :  { %v126_v43 = vmul.f32 %v406_v29, %v100_v20 }
  0x96   :  { %v134_v50 = vadd.f32 %v128_v38, %v94_v42 }
  0x97   :  { %v132_v55 = vadd.f32 %v126_v43, %v92_v45 }
  0x98   :  { %v104_v26 = vpop.permute.xlu1 %103  ;;  %v140_v37 = vpop.permute.xlu0 %139 }
  0x99   :  { %v127_v51 = vmul.f32 %v406_v29, %v104_v26  ;;  %v166_v52 = vmul.f32 %v165_v39, %v140_v37 }
  0x9b   :  { %v133_v60 = vadd.f32 %v127_v51, %v93_v54  ;;  %v172_v61 = vadd.f32 %v166_v52, %v132_v55 }
  0x9c   :  { %v112_v33 = vpop.permute.xlu1 %111  ;;  %v152_v48 = vpop.permute.xlu0 %151 }
  0x9d   :  { %v129_v44 = vmul.f32 %v406_v29, %v112_v33  ;;  %v169_v57 = vmul.f32 %v165_v39, %v152_v48  ;;  %v452_v33 = vand.u32 127, %v48_v16 }
  0x9f   :  { %v135_v56 = vadd.f32 %v129_v44, %v95_v47  ;;  %vm189_vm0 = vcmp.ge.s32.totalorder %v452_v33, 1  ;;  %vm190_vm1 = vcmp.lt.s32.totalorder %v452_v33, 127 }
  0xa1   :  { %v148_v49 = vpop.permute.xlu1 %147  ;;  %v175_v63 = vadd.f32 %v169_v57, %v135_v56  ;;  %v76_v4 = vpop.permute.xlu0 %75 }
  0xa2   :  { %v168_v53 = vmul.f32 %v165_v39, %v148_v49  ;;  %v90_v15 = vmul.f32 %v85_v27, %v76_v4 }
  0xa4   :  { %v174_v58 = vadd.f32 %v168_v53, %v134_v50 }
  0xa5   :  { %v144_v59 = vpop.permute.xlu1 %143 }
  0xa6   :  { %v167_v62 = vmul.f32 %v165_v39, %v144_v59  ;;  %v178_v0 = vmul.f32 %v174_v58, %v172_v61  ;;  %v116_v11 = vpop.permute.xlu0 %115 }
  0xa7   :  { %v130_v21 = vmul.f32 %v406_v29, %v116_v11 }
  0xa8   :  { %v173_v1 = vadd.f32 %v167_v62, %v133_v60  ;;  %v180_v5 = vrot.slane %v178_v0, 1 }
  0xaa   :  { %v179_v2 = vmul.f32 %v175_v63, %v173_v1  ;;  %v41_v3 = vpop.permute.xlu1 %40 }
  0xab   :  { %v56_v14 = vmul.f32 %v51_v28, %v41_v3  ;;  %v160_v18 = vpop.permute.xlu0 %159 }
  0xac   :  { %v181_v6 = vrot.slane %v179_v2, 1  ;;  %v412_v7 = vadd.f32 %v179_v2, %v178_v0  ;;  %v420_v10 = vadd.f32 %v180_v5, %v179_v2  ;;  %v171_v24 = vmul.f32 %v165_v39, %v160_v18 }
  0xad   :  { %v96_v20 = vadd.f32 %v90_v15, %v56_v14 }
  0xae   :  { %191 = vrot.lane.b32.xlu1 %v412_v7, %s367_s0  ;;  %v46_v8 = vpop.permute.xlu1 %45  ;;  %v416_v9 = vadd.f32 %v181_v6, %v180_v5 }
  0xaf   :  { %v57_v12 = vmul.f32 %v51_v28, %v46_v8  ;;  %v136_v26 = vadd.f32 %v130_v21, %v96_v20 }
  0xb0   :  { %197 = vrot.lane.b32.xlu0 %v416_v9, %s367_s0 }
  0xb2   :  { %194 = vrot.lane.b32.xlu1 %v420_v10, %s367_s0 }
  0xb3   :  { %v80_v13 = vpop.permute.xlu1 %79 }
  0xb4   :  { %v91_v17 = vmul.f32 %v85_v27, %v80_v13  ;;  %215 = vrot.lane.b32.xlu0 %v420_v10, %s368_s22 }
  0xb6   :  { %212 = vrot.lane.b32.xlu1 %v412_v7, %s368_s22  ;;  %v97_v19 = vadd.f32 %v91_v17, %v57_v12 }
  0xb8   :  { %v120_v22 = vpop.permute.xlu1 %119 }
  0xb9   :  { %v131_v23 = vmul.f32 %v406_v29, %v120_v22 }
  0xba   :  { %218 = vrot.lane.b32.xlu1 %v416_v9, %s368_s22 }
  0xbb   :  { %v137_v25 = vadd.f32 %v131_v23, %v97_v19 }
  0xbd   :  { %v429_v28 = vadd.f32 %v171_v24, %v137_v25  ;;  %v156_v27 = vpop.permute.xlu1 %155 }
  0xbe   :  { %v170_v30 = vmul.f32 %v165_v39, %v156_v27 }
  0xbf   :  { %203 = vrot.lane.b32.xlu1 %v429_v28, %s367_s0  ;;  %v434_v31 = vrot.slane %v429_v28, 1 }
  0xc0   :  { %v436_v32 = vadd.f32 %v170_v30, %v136_v26 }
  0xc2   :  { %200 = vrot.lane.b32.xlu0 %v436_v32, %s367_s0  ;;  %v441_v29 = vrot.slane %v436_v32, 1 }
  0xc3   :  { %209 = vrot.lane.b32.xlu1 %v434_v31, %s367_s0 }
  0xc6   :  { %206 = vrot.lane.b32.xlu0 %v441_v29, %s367_s0 }
  0xc7   :  { %224 = vrot.lane.b32.xlu1 %v429_v28, %s368_s22 }
  0xca   :  { %221 = vrot.lane.b32.xlu0 %v436_v32, %s368_s22 }
  0xcb   :  { %230 = vrot.lane.b32.xlu1 %v434_v31, %s368_s22 }
  0xce   :  { %227 = vrot.lane.b32.xlu0 %v441_v29, %s368_s22 }
 0x120   :  { %v192_v34 = vpop.permute.xlu1 %191 }
 0x121   :  { %v193_v37 = vsel %vm189_vm0, %v192_v34, 0.0 }
 0x122   :  { %v198_v35 = vpop.permute.xlu0 %197 }
 0x123   :  { %v199_v40 = vsel %vm189_vm0, %v198_v35, 0.0 }
 0x124   :  { %v195_v36 = vpop.permute.xlu1 %194 }
 0x125   :  { %v196_v38 = vsel %vm189_vm0, %v195_v36, 0.0 }
 0x126   :  { %v233_v39 = vmax.f32 %v193_v37, %v196_v38  ;;  %v216_v44 = vpop.permute.xlu0 %215 }
 0x127   :  { %v217_v49 = vsel %vm190_vm1, %v216_v44, 0.0 }
 0x128   :  { %v234_v41 = vmax.f32 %v233_v39, %v199_v40  ;;  %v213_v16 = vpop.permute.xlu1 %212 }
 0x129   :  { %v214_v46 = vsel %vm190_vm1, %v213_v16, 0.0 }
 0x12a   :  { %v235_v42 = vmax.f32 %v234_v41, %v412_v7 }
 0x12c   :  { %v236_v43 = vmax.f32 %v235_v42, %v420_v10  ;;  %v219_v48 = vpop.permute.xlu1 %218 }
 0x12d   :  { %v220_v51 = vsel %vm190_vm1, %v219_v48, 0.0 }
 0x12e   :  { %v237_v45 = vmax.f32 %v236_v43, %v416_v9 }
 0x130   :  { %v238_v47 = vmax.f32 %v237_v45, %v214_v46 }
 0x131   :  { %v204_v3 = vpop.permute.xlu1 %203 }
 0x132   :  { %v239_v50 = vmax.f32 %v238_v47, %v217_v49 }
 0x134   :  { %v240_v52 = vmax.f32 %v239_v50, %v220_v51  ;;  %v201_v0 = vpop.permute.xlu0 %200 }
 0x135   :  { %v202_v11 = vsel %vm189_vm0, %v201_v0, 0.0  ;;  %v210_v20 = vpop.permute.xlu1 %209 }
 0x136   :  { %v241_v53 = vsub.f32 %v193_v37, %v240_v52  ;;  %v246_v54 = vsub.f32 %v196_v38, %v240_v52  ;;  %v254_v55 = vsub.f32 %v199_v40, %v240_v52  ;;  %v262_v56 = vsub.f32 %v412_v7, %v240_v52 }
 0x137   :  { %v270_v61 = vsub.f32 %v420_v10, %v240_v52  ;;  %v278_v62 = vsub.f32 %v416_v9, %v240_v52  ;;  %v286_v1 = vsub.f32 %v214_v46, %v240_v52  ;;  %v294_v2 = vsub.f32 %v217_v49, %v240_v52 }
 0x138   :  { %v242_v57 = vmul.f32 1.442695, %v241_v53  ;;  %v247_v58 = vmul.f32 1.442695, %v246_v54  ;;  %v255_v59 = vmul.f32 1.442695, %v254_v55  ;;  %v302_v5 = vsub.f32 %v220_v51, %v240_v52  ;;  %v207_v12 = vpop.permute.xlu0 %206 }
 0x139   :  { %v263_v60 = vmul.f32 1.442695, %v262_v56  ;;  %v271_v63 = vmul.f32 1.442695, %v270_v61  ;;  %v279_v4 = vmul.f32 1.442695, %v278_v62  ;;  %v225_v53 = vpop.permute.xlu1 %224 }
 0x13a   :  { %343 = vpow2.f32 %v242_v57  ;;  %v287_v6 = vmul.f32 1.442695, %v286_v1  ;;  %v295_v7 = vmul.f32 1.442695, %v294_v2  ;;  %v205_v10 = vsel %vm189_vm0, %v204_v3, 0.0 }
 0x13b   :  { %345 = vpow2.f32 %v247_v58  ;;  %v303_v13 = vmul.f32 1.442695, %v302_v5  ;;  %v208_v17 = vsel %vm189_vm0, %v207_v12, 0.0  ;;  %v211_v24 = vsel %vm189_vm0, %v210_v20, 0.0 }
 0x13c   :  { %347 = vpow2.f32 %v255_v59  ;;  %v222_v49 = vpop.permute.xlu0 %221  ;;  %v226_v59 = vsel %vm190_vm1, %v225_v53, 0.0 }
 0x13d   :  { %349 = vpow2.f32 %v263_v60  ;;  %v231_v2 = vpop.permute.xlu1 %230 }
 0x13e   :  { %351 = vpow2.f32 %v271_v63 }
 0x13f   :  { %353 = vpow2.f32 %v279_v4 }
 0x140   :  { %355 = vpow2.f32 %v287_v6  ;;  %v228_v63 = vpop.permute.xlu0 %227  ;;  %v232_v6 = vsel %vm190_vm1, %v231_v2, 0.0 }
 0x141   :  { %357 = vpow2.f32 %v295_v7 }
 0x142   :  { %359 = vpow2.f32 %v303_v13 }
 0x144   :  { %v344_v8 = vpop.eup %343 }
 0x145   :  { %v346_v9 = vpop.eup %345  ;;  %v245_v14 = vmul.f32 %v344_v8, %v205_v10  ;;  %v244_v15 = vmul.f32 %v344_v8, %v202_v11 }
 0x146   :  { %v348_v18 = vpop.eup %347  ;;  %v250_v19 = vmul.f32 %v346_v9, %v205_v10  ;;  %v252_v21 = vmul.f32 %v346_v9, %v208_v17  ;;  %v249_v22 = vadd.f32 %v346_v9, %v344_v8 }
 0x147   :  { %v350_v23 = vpop.eup %349  ;;  %v260_v26 = vmul.f32 %v348_v18, %v211_v24  ;;  %v258_v30 = vmul.f32 %v348_v18, %v208_v17 }
 0x148   :  { %v251_v25 = vadd.f32 %v250_v19, %v244_v15  ;;  %v253_v27 = vadd.f32 %v252_v21, %v245_v14  ;;  %v257_v34 = vadd.f32 %v348_v18, %v249_v22  ;;  %v266_v37 = vmul.f32 %v350_v23, %v436_v32  ;;  %v352_v39 = vpop.eup %351 }
 0x149   :  { %v268_v38 = vmul.f32 %v350_v23, %v429_v28  ;;  %v354_v43 = vpop.eup %353  ;;  %v276_v44 = vmul.f32 %v352_v39, %v441_v29  ;;  %v274_v45 = vmul.f32 %v352_v39, %v429_v28  ;;  %v223_v28 = vsel %vm190_vm1, %v222_v49, 0.0 }
 0x14a   :  { %v259_v35 = vadd.f32 %v258_v30, %v251_v25  ;;  %v261_v36 = vadd.f32 %v260_v26, %v253_v27  ;;  %v265_v40 = vadd.f32 %v350_v23, %v257_v34  ;;  %v356_v47 = vpop.eup %355  ;;  %v284_v32 = vmul.f32 %v354_v43, %v434_v31 }
 0x14b   :  { %v358_v51 = vpop.eup %357  ;;  %v282_v54 = vmul.f32 %v354_v43, %v441_v29  ;;  %v292_v61 = vmul.f32 %v356_v47, %v226_v59  ;;  %v290_v62 = vmul.f32 %v356_v47, %v223_v28  ;;  %v229_v29 = vsel %vm190_vm1, %v228_v63, 0.0 }
 0x14c   :  { %v267_v41 = vadd.f32 %v266_v37, %v259_v35  ;;  %v269_v42 = vadd.f32 %v268_v38, %v261_v36  ;;  %v273_v16 = vadd.f32 %v352_v39, %v265_v40  ;;  %v360_v55 = vpop.eup %359  ;;  %v298_v1 = vmul.f32 %v358_v51, %v226_v59 }
 0x14d   :  { %v300_v3 = vmul.f32 %v358_v51, %v229_v29  ;;  %v308_v7 = vmul.f32 %v360_v55, %v232_v6  ;;  %v306_v8 = vmul.f32 %v360_v55, %v229_v29 }
 0x14e   :  { %v281_v46 = vadd.f32 %v354_v43, %v273_v16  ;;  %v277_v48 = vadd.f32 %v276_v44, %v269_v42  ;;  %v275_v50 = vadd.f32 %v274_v45, %v267_v41 }
 0x150   :  { %v289_v52 = vadd.f32 %v356_v47, %v281_v46  ;;  %v285_v57 = vadd.f32 %v284_v32, %v277_v48  ;;  %v283_v58 = vadd.f32 %v282_v54, %v275_v50 }
 0x152   :  { %v297_v56 = vadd.f32 %v358_v51, %v289_v52  ;;  %v293_v0 = vadd.f32 %v292_v61, %v285_v57  ;;  %v291_v31 = vadd.f32 %v290_v62, %v283_v58 }
 0x154   :  { %v305_v60 = vadd.f32 %v360_v55, %v297_v56  ;;  %v299_v4 = vadd.f32 %v298_v1, %v291_v31  ;;  %v301_v5 = vadd.f32 %v300_v3, %v293_v0 }
 0x156   :  { %361 = vrcp.f32 %v305_v60  ;;  %v307_v10 = vadd.f32 %v306_v8, %v299_v4  ;;  %v309_v11 = vadd.f32 %v308_v7, %v301_v5 }
 0x160   :  { %v362_v12 = vpop.eup %361 }
 0x161   :  { %v311_v9 = vmul.f32 %v362_v12, %v307_v10  ;;  %v313_v13 = vmul.f32 %v362_v12, %v309_v11 }
 0x163   :  { %312 = vst [vmem:[%s504_s2] ss:$2 sm:$0xff] %v311_v9  ;;  %320 = vst [vmem:[%s504_s2 + $0x1] ss:$2 sm:$0xff] %v313_v13 }

</bundles_post_ra>
